<compile_context>
chip_gen: v6e
topology: v6e:2x2x1
jax: 0.10.0
libtpu: 0.0.40
codegen_flags: <defaults>
</compile_context>

<pallas_src>
import functools

import jax
import jax.numpy as jnp
from jax import lax
from jax.experimental import pallas as pl
from jax.experimental.pallas import tpu as pltpu


# ----------------------------------------------------------------------------
# Pallas kernel: fused  relu( D^-1/2 (A@A.T + missing-self-loops) D^-1/2 (XW) + b )
# ----------------------------------------------------------------------------
def _gcn_prop_kernel(a_row_ref, a_t_ref, u_ref, dis_ref, b_ref, out_ref,
                     abar_ref, acc_ref, *, tk):
    # a_row_ref : (TM, N_pad) bf16  resident row panel of A (changes only with i)
    # a_t_ref   : (TK, TM)    bf16  streaming block of A.T at (k, j)
    # u_ref     : (TM, H_pad) bf16  D^-1/2 * (X @ W), rows j*TM..
    # dis_ref   : (TM, 1)     f32   D^-1/2, rows i*TM..
    # b_ref     : (1, H_pad)  f32   conv bias
    # out_ref   : (TM, H_pad) f32   n_reps rows i*TM..
    # abar_ref  : (TM, TM)    f32   VMEM scratch: A_bar tile, accumulated over k
    # acc_ref   : (TM, H_pad) f32   VMEM scratch: output accumulator over j
    i = pl.program_id(0)
    j = pl.program_id(1)
    k = pl.program_id(2)

    @pl.when((j == 0) & (k == 0))
    def _init_acc():
        acc_ref[...] = jnp.zeros_like(acc_ref)

    @pl.when(k == 0)
    def _init_abar():
        abar_ref[...] = jnp.zeros_like(abar_ref)

    # (TM, TM) partial tile of A_bar = A @ A.T, contracting a TK-chunk of N.
    # The K-chunk is sliced out of the resident row panel (128-aligned).
    koff = pl.multiple_of(k * tk, 128)
    abar_ref[...] += jnp.dot(
        a_row_ref[:, pl.ds(koff, tk)], a_t_ref[...],
        preferred_element_type=jnp.float32)

    @pl.when(k == pl.num_programs(2) - 1)
    def _epilogue():
        # add_remaining_self_loops: zero diagonal entries of A_bar become 1.
        # Diagonal elements only live in tiles with i == j, so gate the
        # iota/where VPU work instead of paying it every step.
        @pl.when(i == j)
        def _fix_diag():
            t = abar_ref[...]
            r = lax.broadcasted_iota(jnp.int32, t.shape, 0)
            c = lax.broadcasted_iota(jnp.int32, t.shape, 1)
            abar_ref[...] = jnp.where((r == c) & (t == 0.0), 1.0, t)

        # Accumulate Â_tile @ u  (bf16 MXU operands, f32 accumulation).
        acc_ref[...] += jnp.dot(
            abar_ref[...].astype(jnp.bfloat16), u_ref[...],
            preferred_element_type=jnp.float32)

        @pl.when(j == pl.num_programs(1) - 1)
        def _finalize():
            out_ref[...] = jnp.maximum(
                dis_ref[...] * acc_ref[...] + b_ref[...], 0.0)


# ----------------------------------------------------------------------------
# Tile / VMEM planning (generation-aware)
# ----------------------------------------------------------------------------
def _round_up(v, m):
    return ((v + m - 1) // m) * m


@functools.lru_cache(maxsize=1)
def _vmem_capacity_bytes():
    try:
        return int(pltpu.get_tpu_info().vmem_capacity_bytes)
    except Exception:
        return 64 * 1024 * 1024      # conservative fallback (v7x per-TC VMEM)


def _pick_tk(n_pad, tm, tk_cap):
    """Largest multiple of tm that divides n_pad and is <= max(tk_cap, tm)."""
    nblk = n_pad // tm
    best = 1
    for d in range(1, nblk + 1):
        if nblk % d == 0 and tm * d <= max(tk_cap, tm):
            best = d
    return tm * best


def _plan_tiles(n, h_pad, tm_cap, tk_cap, budget):
    """Pick (TM, N_pad, TK).  TM is a multiple of 128 in [128, tm_cap]."""
    n128 = _round_up(max(int(n), 1), 128)
    tm = max(128, min(int(tm_cap), n128))
    tm -= tm % 128
    tm = max(tm, 128)

    def vmem_cost(tm_):
        n_pad_ = _round_up(n128, tm_)
        tk_ = _pick_tk(n_pad_, tm_, tk_cap)
        resident = tm_ * n_pad_ * 2                  # a_row panel, single buffer
        stream = 2 * tk_ * tm_ * 2                   # A.T blocks, double buffered
        abar = tm_ * tm_ * 4                         # abar scratch
        feats = (2 * tm_ * h_pad * 2                 # u, double buffered
                 + 2 * tm_ * h_pad * 4               # out, double buffered
                 + tm_ * h_pad * 4)                  # acc scratch
        return resident + stream + abar + feats + (1 << 20)

    while tm > 128 and vmem_cost(tm) > budget:
        tm -= 128
    n_pad = _round_up(n128, tm)
    tk = _pick_tk(n_pad, tm, tk_cap)
    return tm, n_pad, tk


# ----------------------------------------------------------------------------
# Forward wrapper
# ----------------------------------------------------------------------------
@functools.partial(jax.jit, static_argnames=("num_nodes", "single_buffer_row",
                                             "tm_cap", "tk_cap"))
def _forward_jit(x, edge_index, params, num_nodes, single_buffer_row,
                 tm_cap, tk_cap):
    w_conv, b_conv, w_fc, b_fc = params
    N = int(num_nodes)
    H = w_conv.shape[1]              # hidden_channels // 2
    C = w_fc.shape[1]
    H_pad = _round_up(H, 128)        # lane-dense output slab

    # Generation-aware VMEM budgeting (v5e/v6e: 128 MiB, v7x: 64 MiB per TC).
    vmem_cap = _vmem_capacity_bytes()
    vmem_limit = min(int(0.70 * vmem_cap), 96 * 1024 * 1024)
    plan_budget = int(0.75 * vmem_limit)

    TM, N_pad, TK = _plan_tiles(N, H_pad, tm_cap, tk_cap, plan_budget)

    src = edge_index[0]
    dst = edge_index[1]

    # Dense adjacency (to_dense_adj: duplicate edges summed), built directly at
    # padded size.  A.T is built by swapping the scatter indices (no O(N^2)
    # transpose pass); feeding A.T keeps the kernel's first matmul contracting
    # on the RHS leading dim (clean MXU orientation).  bf16 halves DMA traffic.
    A = jnp.zeros((N_pad, N_pad), jnp.float32).at[src, dst].add(1.0)
    A_bf = A.astype(jnp.bfloat16)
    A_t_bf = (jnp.zeros((N_pad, N_pad), jnp.float32)
              .at[dst, src].add(1.0).astype(jnp.bfloat16))

    # GCN normalisation stats for Â = A@A.T (+ remaining self loops), computed
    # with cheap pre-passes:
    #   col_sum from the edge list (O(E));
    #   rowsum(A@A.T)[i] = A[i,:] . col_sum   (bf16 read, f32 accumulation);
    #   diag(A@A.T)[i]   = sum_k A[i,k]^2     (bf16 read, fused cast+reduce).
    col_sum = jnp.zeros((N_pad,), jnp.float32).at[dst].add(1.0)
    deg0 = jnp.dot(A_bf, col_sum.astype(jnp.bfloat16),
                   preferred_element_type=jnp.float32)
    diag = jnp.sum(jnp.square(A_bf.astype(jnp.float32)), axis=1)
    missing = (diag == 0.0).astype(jnp.float32)      # self loops added with weight 1
    deg = deg0 + missing                             # >= 1 everywhere
    dis = lax.rsqrt(deg).reshape(N_pad, 1)           # D^{-1/2}

    # Feature-side projection, column-scaled by D^{-1/2} (reassociated so the
    # N^2 contraction runs over H lanes).  Tiny O(N*Din*H) op -> XLA.
    x_pad = jnp.pad(x.astype(jnp.float32), ((0, N_pad - N), (0, 0)))
    u = dis * (x_pad @ w_conv)                       # [N_pad, H]
    u_pad = jnp.pad(u, ((0, 0), (0, H_pad - H))).astype(jnp.bfloat16)

    b_pad = jnp.pad(b_conv.reshape(1, H).astype(jnp.float32),
                    ((0, 0), (0, H_pad - H)))

    # The A-row panel's block index only changes with the outermost grid axis,
    # so a single pipeline buffer suffices (frees one adjacency-sized buffer).
    row_kwargs = {"pipeline_mode": pl.Buffered(1)} if single_buffer_row else {}

    grid = (N_pad // TM, N_pad // TM, N_pad // TK)
    n_reps_pad = pl.pallas_call(
        functools.partial(_gcn_prop_kernel, tk=TK),
        out_shape=jax.ShapeDtypeStruct((N_pad, H_pad), jnp.float32),
        grid=grid,
        in_specs=[
            pl.BlockSpec((TM, N_pad), lambda i, j, k: (i, 0), **row_kwargs),
            pl.BlockSpec((TK, TM), lambda i, j, k: (k, j)),   # A.T stream
            pl.BlockSpec((TM, H_pad), lambda i, j, k: (j, 0)),  # u = D^-1/2 (XW)
            pl.BlockSpec((TM, 1), lambda i, j, k: (i, 0)),       # D^-1/2 (rows)
            pl.BlockSpec((1, H_pad), lambda i, j, k: (0, 0)),    # bias
        ],
        out_specs=pl.BlockSpec((TM, H_pad), lambda i, j, k: (i, 0)),
        scratch_shapes=[
            pltpu.VMEM((TM, TM), jnp.float32),       # A_bar tile accumulator
            pltpu.VMEM((TM, H_pad), jnp.float32),    # output accumulator
        ],
        compiler_params=pltpu.CompilerParams(
            dimension_semantics=("parallel", "arbitrary", "arbitrary"),
            vmem_limit_bytes=vmem_limit,
        ),
    )(A_bf, A_t_bf, u_pad, dis, b_pad)

    n_reps = n_reps_pad[:N, :H]

    # Tiny epilogue kept in XLA: readout, (eval-mode) dropout, fc, softmax.
    g_rep = jnp.mean(n_reps, axis=0, keepdims=True)
    logits = g_rep @ w_fc + b_fc.reshape(1, C)
    probs = jax.nn.softmax(logits, axis=1)
    return probs, n_reps, g_rep


_ROW_SINGLE_BUFFER_OK = True


def gadall_gcn_forward(x, edge_index, params, num_nodes, *,
                       tm_cap=512, tk_cap=2048):
    """GADAll_GCN forward (eval mode). Returns (probs, n_reps, g_rep)."""
    global _ROW_SINGLE_BUFFER_OK
    if _ROW_SINGLE_BUFFER_OK:
        try:
            return _forward_jit(x, edge_index, params, int(num_nodes), True,
                                int(tm_cap), int(tk_cap))
        except Exception:
            # pipeline_mode=pl.Buffered(1) unsupported on this jax/libtpu combo;
            # fall back to default double buffering of the A-row panel.
            _ROW_SINGLE_BUFFER_OK = False
    return _forward_jit(x, edge_index, params, int(num_nodes), False,
                        int(tm_cap), int(tk_cap))


# ----------------------------------------------------------------------------
# Pure-JAX reference (dense math, f32) for correctness checking
# ----------------------------------------------------------------------------
def _reference_forward(x, edge_index, params, num_nodes):
    w_conv, b_conv, w_fc, b_fc = params
    N = int(num_nodes)
    A = jnp.zeros((N, N), jnp.float32).at[edge_index[0], edge_index[1]].add(1.0)
    A_bar = A @ A.T
    diag = jnp.diagonal(A_bar)
    A_hat = A_bar + jnp.diag((diag == 0.0).astype(jnp.float32))
    deg = jnp.sum(A_hat, axis=1)
    dis = 1.0 / jnp.sqrt(deg)
    A_norm = dis[:, None] * A_hat * dis[None, :]
    n_reps = jax.nn.relu(A_norm @ (x @ w_conv) + b_conv.reshape(1, -1))
    g_rep = jnp.mean(n_reps, axis=0, keepdims=True)
    probs = jax.nn.softmax(g_rep @ w_fc + b_fc.reshape(1, -1), axis=1)
    return probs, n_reps, g_rep


# ----------------------------------------------------------------------------
# Parameter init (shapes match conv2=GCNConv(Din, H//2) and fc=Linear(H//2, C))
# ----------------------------------------------------------------------------
def init_params(key, input_dim, hidden_channels, num_classes):
    h = hidden_channels // 2
    ks = jax.random.split(key, 4)

    def u(k, shape, fan_in):
        bound = 1.0 / jnp.sqrt(jnp.float32(fan_in))
        return jax.random.uniform(k, shape, jnp.float32, -bound, bound)

    w_conv = u(ks[0], (input_dim, h), input_dim)   # GCNConv weight, stored [in, out]
    b_conv = u(ks[1], (h,), input_dim)
    w_fc = u(ks[2], (h, num_classes), h)           # Linear weight, stored [in, out]
    b_fc = u(ks[3], (num_classes,), h)
    return (w_conv, b_conv, w_fc, b_fc)


if __name__ == "__main__":
    # ---- test 1: tiny graph (single-tile grid) ------------------------------
    num_nodes = 8
    input_dim = 16
    hidden_channels = 32   # conv2 output / fc input = 16
    num_classes = 4

    key = jax.random.PRNGKey(0)
    kx, kp = jax.random.split(key)
    x = jax.random.normal(kx, (num_nodes, input_dim), jnp.float32)

    # Deterministic small graph: ring plus a few chords (directed edges).
    src = jnp.array([0, 1, 2, 3, 4, 5, 6, 7, 0, 3, 5, 2], dtype=jnp.int32)
    dst = jnp.array([1, 2, 3, 4, 5, 6, 7, 0, 4, 7, 1, 6], dtype=jnp.int32)
    edge_index = jnp.stack([src, dst], axis=0)     # [2, E]

    params = init_params(kp, input_dim, hidden_channels, num_classes)

    probs, n_reps, g_rep = gadall_gcn_forward(x, edge_index, params, num_nodes)
    jax.block_until_ready((probs, n_reps, g_rep))

    assert probs.shape == (1, num_classes)
    assert n_reps.shape == (num_nodes, hidden_channels // 2)
    assert g_rep.shape == (1, hidden_channels // 2)
    assert bool(jnp.isclose(jnp.sum(probs), 1.0, atol=1e-5))

    rp, rn, rg = _reference_forward(x, edge_index, params, num_nodes)
    assert bool(jnp.allclose(probs, rp, rtol=5e-2, atol=5e-2))
    assert bool(jnp.allclose(n_reps, rn, rtol=5e-2, atol=5e-2))
    assert bool(jnp.allclose(g_rep, rg, rtol=5e-2, atol=5e-2))

    # ---- test 2: larger random graph, default tiling ------------------------
    n2, e2 = 300, 1200
    k1, k2, k3, k4 = jax.random.split(jax.random.PRNGKey(1), 4)
    src2 = jax.random.randint(k1, (e2,), 0, n2, jnp.int32)
    dst2 = jax.random.randint(k2, (e2,), 0, n2, jnp.int32)
    edge_index2 = jnp.stack([src2, dst2], axis=0)
    x2 = jax.random.normal(k3, (n2, input_dim), jnp.float32)
    params2 = init_params(k4, input_dim, hidden_channels, num_classes)

    rp2, rn2, rg2 = _reference_forward(x2, edge_index2, params2, n2)

    p2, nr2, gr2 = gadall_gcn_forward(x2, edge_index2, params2, n2)
    jax.block_until_ready((p2, nr2, gr2))
    assert bool(jnp.allclose(nr2, rn2, rtol=5e-2, atol=5e-2))
    assert bool(jnp.allclose(gr2, rg2, rtol=5e-2, atol=5e-2))
    assert bool(jnp.allclose(p2, rp2, rtol=5e-2, atol=5e-2))

    # ---- test 3: same graph, forced small tiles to exercise the full
    #      (i, j, k) grid, the pl.when diagonal gating and the resident panel.
    p3, nr3, gr3 = gadall_gcn_forward(x2, edge_index2, params2, n2,
                                      tm_cap=128, tk_cap=128)
    jax.block_until_ready((p3, nr3, gr3))
    assert bool(jnp.allclose(nr3, rn2, rtol=5e-2, atol=5e-2))
    assert bool(jnp.allclose(gr3, rg2, rtol=5e-2, atol=5e-2))
    assert bool(jnp.allclose(p3, rp2, rtol=5e-2, atol=5e-2))

    print("KERNEL_OK")
</pallas_src>

<mosaic_0001>
module attributes {stable_mosaic.version = 11 : i64} {
  func.func @_gcn_prop_kernel(%arg0: i32, %arg1: i32, %arg2: i32, %arg3: memref<128x128xbf16, #tpu.memory_space<vmem>>, %arg4: memref<128x128xbf16, #tpu.memory_space<vmem>>, %arg5: memref<128x128xbf16, #tpu.memory_space<vmem>>, %arg6: memref<128x1xf32, #tpu.memory_space<vmem>>, %arg7: memref<1x128xf32, #tpu.memory_space<vmem>>, %arg8: memref<128x128xf32, #tpu.memory_space<vmem>>, %arg9: memref<128x128xf32, #tpu.memory_space<vmem>>, %arg10: memref<128x128xf32, #tpu.memory_space<vmem>>) attributes {dimension_semantics = [#tpu.dimension_semantics<parallel>, #tpu.dimension_semantics<arbitrary>, #tpu.dimension_semantics<arbitrary>], iteration_bounds = array<i64: 1, 1, 1>, scalar_prefetch = 0 : i64, scratch_operands = 2 : i64, tpu.core_type = #tpu.core_type<tc>, window_params = [{pipeline_mode = #tpu.pipeline_mode<synchronous>, transform_indices = @transform_0, window_bounds = array<i64: 128, 128>}, {transform_indices = @transform_1, window_bounds = array<i64: 128, 128>}, {transform_indices = @transform_2, window_bounds = array<i64: 128, 128>}, {transform_indices = @transform_3, window_bounds = array<i64: 128, 1>}, {pipeline_mode = #tpu.pipeline_mode<synchronous>, transform_indices = @transform_4, window_bounds = array<i64: 1, 128>}, {transform_indices = @transform_5, window_bounds = array<i64: 128, 128>}]} {
    %c0_i32 = arith.constant 0 : i32
    %0 = arith.cmpi eq, %arg1, %c0_i32 : i32
    %c0_i32_0 = arith.constant 0 : i32
    %1 = arith.cmpi eq, %arg2, %c0_i32_0 : i32
    %2 = arith.andi %0, %1 : i1
    %3 = arith.extui %2 : i1 to i32
    %c0_i32_1 = arith.constant 0 : i32
    %4 = arith.cmpi ne, %3, %c0_i32_1 : i32
    scf.if %4 {
      %cst_12 = arith.constant 0.000000e+00 : f32
      %20 = vector.broadcast %cst_12 : f32 to vector<128x128xf32>
      %c0_13 = arith.constant 0 : index
      %c0_14 = arith.constant 0 : index
      %21 = vector.load %arg10[%c0_13, %c0_14] : memref<128x128xf32, #tpu.memory_space<vmem>>, vector<128x128xf32>
      tpu.vector_store %arg10[%c0_13, %c0_14], %20 {strides = array<i32>} : memref<128x128xf32, #tpu.memory_space<vmem>>, vector<128x128xf32>,
    } else {
    }
    %c0_i32_2 = arith.constant 0 : i32
    %5 = arith.cmpi eq, %arg2, %c0_i32_2 : i32
    %6 = arith.extui %5 : i1 to i32
    %c0_i32_3 = arith.constant 0 : i32
    %7 = arith.cmpi ne, %6, %c0_i32_3 : i32
    scf.if %7 {
      %cst_12 = arith.constant 0.000000e+00 : f32
      %20 = vector.broadcast %cst_12 : f32 to vector<128x128xf32>
      %c0_13 = arith.constant 0 : index
      %c0_14 = arith.constant 0 : index
      %21 = vector.load %arg9[%c0_13, %c0_14] : memref<128x128xf32, #tpu.memory_space<vmem>>, vector<128x128xf32>
      tpu.vector_store %arg9[%c0_13, %c0_14], %20 {strides = array<i32>} : memref<128x128xf32, #tpu.memory_space<vmem>>, vector<128x128xf32>,
    } else {
    }
    %c128_i32 = arith.constant 128 : i32
    %8 = arith.muli %arg2, %c128_i32 : i32
    %9 = tpu.assume_multiple %8, 128 : i32
    %c0 = arith.constant 0 : index
    %c0_4 = arith.constant 0 : index
    %10 = vector.load %arg9[%c0, %c0_4] : memref<128x128xf32, #tpu.memory_space<vmem>>, vector<128x128xf32>
    %c0_5 = arith.constant 0 : index
    %11 = arith.index_cast %9 : i32 to index
    %12 = vector.load %arg3[%c0_5, %11] : memref<128x128xbf16, #tpu.memory_space<vmem>>, vector<128x128xbf16>
    %c0_6 = arith.constant 0 : index
    %c0_7 = arith.constant 0 : index
    %13 = vector.load %arg4[%c0_6, %c0_7] : memref<128x128xbf16, #tpu.memory_space<vmem>>, vector<128x128xbf16>
    %cst = arith.constant dense<0.000000e+00> : vector<128x128xf32>
    %14 = tpu.matmul %12, %13, %cst {dimension_numbers = #tpu.dot_dimension_numbers<[1], [0], [0], [1], [0, 0, 1, 1], [], []>} : vector<128x128xbf16>, vector<128x128xbf16>, vector<128x128xf32> -> vector<128x128xf32>
    %15 = arith.addf %10, %14 : vector<128x128xf32>
    %c0_8 = arith.constant 0 : index
    %c0_9 = arith.constant 0 : index
    %16 = vector.load %arg9[%c0_8, %c0_9] : memref<128x128xf32, #tpu.memory_space<vmem>>, vector<128x128xf32>
    tpu.vector_store %arg9[%c0_8, %c0_9], %15 {strides = array<i32>} : memref<128x128xf32, #tpu.memory_space<vmem>>, vector<128x128xf32>,
    %c0_i32_10 = arith.constant 0 : i32
    %17 = arith.cmpi eq, %arg2, %c0_i32_10 : i32
    %18 = arith.extui %17 : i1 to i32
    %c0_i32_11 = arith.constant 0 : i32
    %19 = arith.cmpi ne, %18, %c0_i32_11 : i32
    scf.if %19 {
      %20 = arith.cmpi eq, %arg0, %arg1 : i32
      %21 = arith.extui %20 : i1 to i32
      %c0_i32_12 = arith.constant 0 : i32
      %22 = arith.cmpi ne, %21, %c0_i32_12 : i32
      scf.if %22 {
        %c0_24 = arith.constant 0 : index
        %c0_25 = arith.constant 0 : index
        %33 = vector.load %arg9[%c0_24, %c0_25] : memref<128x128xf32, #tpu.memory_space<vmem>>, vector<128x128xf32>
        %34 = tpu.iota {dimensions = array<i32: 0>} : vector<128x128xi32>
        %35 = tpu.iota {dimensions = array<i32: 1>} : vector<128x128xi32>
        %36 = arith.cmpi eq, %34, %35 : vector<128x128xi32>
        %cst_26 = arith.constant 0.000000e+00 : f32
        %37 = vector.broadcast %cst_26 : f32 to vector<128x128xf32>
        %38 = arith.cmpf oeq, %33, %37 : vector<128x128xf32>
        %39 = arith.andi %36, %38 : vector<128x128xi1>
        %cst_27 = arith.constant 1.000000e+00 : f32
        %40 = vector.broadcast %cst_27 : f32 to vector<128x128xf32>
        %41 = arith.select %39, %40, %33 : vector<128x128xi1>, vector<128x128xf32>
        %c0_28 = arith.constant 0 : index
        %c0_29 = arith.constant 0 : index
        %42 = vector.load %arg9[%c0_28, %c0_29] : memref<128x128xf32, #tpu.memory_space<vmem>>, vector<128x128xf32>
        tpu.vector_store %arg9[%c0_28, %c0_29], %41 {strides = array<i32>} : memref<128x128xf32, #tpu.memory_space<vmem>>, vector<128x128xf32>,
      } else {
      }
      %c0_13 = arith.constant 0 : index
      %c0_14 = arith.constant 0 : index
      %23 = vector.load %arg10[%c0_13, %c0_14] : memref<128x128xf32, #tpu.memory_space<vmem>>, vector<128x128xf32>
      %c0_15 = arith.constant 0 : index
      %c0_16 = arith.constant 0 : index
      %24 = vector.load %arg9[%c0_15, %c0_16] : memref<128x128xf32, #tpu.memory_space<vmem>>, vector<128x128xf32>
      %25 = arith.truncf %24 : vector<128x128xf32> to vector<128x128xbf16>
      %c0_17 = arith.constant 0 : index
      %c0_18 = arith.constant 0 : index
      %26 = vector.load %arg5[%c0_17, %c0_18] : memref<128x128xbf16, #tpu.memory_space<vmem>>, vector<128x128xbf16>
      %cst_19 = arith.constant dense<0.000000e+00> : vector<128x128xf32>
      %27 = tpu.matmul %25, %26, %cst_19 {dimension_numbers = #tpu.dot_dimension_numbers<[1], [0], [0], [1], [0, 0, 1, 1], [], []>} : vector<128x128xbf16>, vector<128x128xbf16>, vector<128x128xf32> -> vector<128x128xf32>
      %28 = arith.addf %23, %27 : vector<128x128xf32>
      %c0_20 = arith.constant 0 : index
      %c0_21 = arith.constant 0 : index
      %29 = vector.load %arg10[%c0_20, %c0_21] : memref<128x128xf32, #tpu.memory_space<vmem>>, vector<128x128xf32>
      tpu.vector_store %arg10[%c0_20, %c0_21], %28 {strides = array<i32>} : memref<128x128xf32, #tpu.memory_space<vmem>>, vector<128x128xf32>,
      %c0_i32_22 = arith.constant 0 : i32
      %30 = arith.cmpi eq, %arg1, %c0_i32_22 : i32
      %31 = arith.extui %30 : i1 to i32
      %c0_i32_23 = arith.constant 0 : i32
      %32 = arith.cmpi ne, %31, %c0_i32_23 : i32
      scf.if %32 {
        %c0_24 = arith.constant 0 : index
        %c0_25 = arith.constant 0 : index
        %33 = vector.load %arg6[%c0_24, %c0_25] : memref<128x1xf32, #tpu.memory_space<vmem>>, vector<128x1xf32>
        %c0_26 = arith.constant 0 : index
        %c0_27 = arith.constant 0 : index
        %34 = vector.load %arg10[%c0_26, %c0_27] : memref<128x128xf32, #tpu.memory_space<vmem>>, vector<128x128xf32>
        %35 = vector.broadcast %33 : vector<128x1xf32> to vector<128x128xf32>
        %36 = arith.mulf %35, %34 : vector<128x128xf32>
        %c0_28 = arith.constant 0 : index
        %c0_29 = arith.constant 0 : index
        %37 = vector.load %arg7[%c0_28, %c0_29] : memref<1x128xf32, #tpu.memory_space<vmem>>, vector<1x128xf32>
        %38 = vector.broadcast %37 : vector<1x128xf32> to vector<128x128xf32>
        %39 = arith.addf %36, %38 : vector<128x128xf32>
        %cst_30 = arith.constant 0.000000e+00 : f32
        %40 = vector.broadcast %cst_30 : f32 to vector<128x128xf32>
        %41 = arith.maximumf %39, %40 : vector<128x128xf32>
        %c0_31 = arith.constant 0 : index
        %c0_32 = arith.constant 0 : index
        %42 = vector.load %arg8[%c0_31, %c0_32] : memref<128x128xf32, #tpu.memory_space<vmem>>, vector<128x128xf32>
        tpu.vector_store %arg8[%c0_31, %c0_32], %41 {strides = array<i32>} : memref<128x128xf32, #tpu.memory_space<vmem>>, vector<128x128xf32>,
      } else {
      }
    } else {
    }
    return
  }
  func.func @transform_0(%arg0: i32, %arg1: i32, %arg2: i32) -> (i32, i32) {
    %c0_i32 = arith.constant 0 : i32
    %c0_i32_0 = arith.constant 0 : i32
    return %arg0, %c0_i32 : i32, i32
  }
  func.func @transform_1(%arg0: i32, %arg1: i32, %arg2: i32) -> (i32, i32) {
    %c0_i32 = arith.constant 0 : i32
    return %arg2, %arg1 : i32, i32
  }
  func.func @transform_2(%arg0: i32, %arg1: i32, %arg2: i32) -> (i32, i32) {
    %c0_i32 = arith.constant 0 : i32
    %c0_i32_0 = arith.constant 0 : i32
    return %arg1, %c0_i32 : i32, i32
  }
  func.func @transform_3(%arg0: i32, %arg1: i32, %arg2: i32) -> (i32, i32) {
    %c0_i32 = arith.constant 0 : i32
    %c0_i32_0 = arith.constant 0 : i32
    return %arg0, %c0_i32 : i32, i32
  }
  func.func @transform_4(%arg0: i32, %arg1: i32, %arg2: i32) -> (i32, i32) {
    %c0_i32 = arith.constant 0 : i32
    %c0_i32_0 = arith.constant 0 : i32
    %c0_i32_1 = arith.constant 0 : i32
    return %c0_i32, %c0_i32_0 : i32, i32
  }
  func.func @transform_5(%arg0: i32, %arg1: i32, %arg2: i32) -> (i32, i32) {
    %c0_i32 = arith.constant 0 : i32
    %c0_i32_0 = arith.constant 0 : i32
    return %arg0, %c0_i32 : i32, i32
  }
}

module attributes {stable_mosaic.version = 11 : i64} {
  func.func @_gcn_prop_kernel(%arg0: i32, %arg1: i32, %arg2: i32, %arg3: memref<128x128xbf16, #tpu.memory_space<vmem>>, %arg4: memref<128x128xbf16, #tpu.memory_space<vmem>>, %arg5: memref<128x128xbf16, #tpu.memory_space<vmem>>, %arg6: memref<128x1xf32, #tpu.memory_space<vmem>>, %arg7: memref<1x128xf32, #tpu.memory_space<vmem>>, %arg8: memref<128x128xf32, #tpu.memory_space<vmem>>, %arg9: memref<128x128xf32, #tpu.memory_space<vmem>>, %arg10: memref<128x128xf32, #tpu.memory_space<vmem>>) attributes {dimension_semantics = [#tpu.dimension_semantics<parallel>, #tpu.dimension_semantics<arbitrary>, #tpu.dimension_semantics<arbitrary>], iteration_bounds = array<i64: 1, 1, 1>, scalar_prefetch = 0 : i64, scratch_operands = 2 : i64, tpu.core_type = #tpu.core_type<tc>, window_params = [{transform_indices = @transform_0, window_bounds = array<i64: 128, 128>}, {transform_indices = @transform_1, window_bounds = array<i64: 128, 128>}, {transform_indices = @transform_2, window_bounds = array<i64: 128, 128>}, {transform_indices = @transform_3, window_bounds = array<i64: 128, 1>}, {pipeline_mode = #tpu.pipeline_mode<synchronous>, transform_indices = @transform_4, window_bounds = array<i64: 1, 128>}, {transform_indices = @transform_5, window_bounds = array<i64: 128, 128>}]} {
    %c0_i32 = arith.constant 0 : i32
    %0 = arith.cmpi eq, %arg1, %c0_i32 : i32
    %c0_i32_0 = arith.constant 0 : i32
    %1 = arith.cmpi eq, %arg2, %c0_i32_0 : i32
    %2 = arith.andi %0, %1 : i1
    %3 = arith.extui %2 : i1 to i32
    %c0_i32_1 = arith.constant 0 : i32
    %4 = arith.cmpi ne, %3, %c0_i32_1 : i32
    scf.if %4 {
      %cst_12 = arith.constant 0.000000e+00 : f32
      %20 = vector.broadcast %cst_12 : f32 to vector<128x128xf32>
      %c0_13 = arith.constant 0 : index
      %c0_14 = arith.constant 0 : index
      %21 = vector.load %arg10[%c0_13, %c0_14] : memref<128x128xf32, #tpu.memory_space<vmem>>, vector<128x128xf32>
      tpu.vector_store %arg10[%c0_13, %c0_14], %20 {strides = array<i32>} : memref<128x128xf32, #tpu.memory_space<vmem>>, vector<128x128xf32>,
    } else {
    }
    %c0_i32_2 = arith.constant 0 : i32
    %5 = arith.cmpi eq, %arg2, %c0_i32_2 : i32
    %6 = arith.extui %5 : i1 to i32
    %c0_i32_3 = arith.constant 0 : i32
    %7 = arith.cmpi ne, %6, %c0_i32_3 : i32
    scf.if %7 {
      %cst_12 = arith.constant 0.000000e+00 : f32
      %20 = vector.broadcast %cst_12 : f32 to vector<128x128xf32>
      %c0_13 = arith.constant 0 : index
      %c0_14 = arith.constant 0 : index
      %21 = vector.load %arg9[%c0_13, %c0_14] : memref<128x128xf32, #tpu.memory_space<vmem>>, vector<128x128xf32>
      tpu.vector_store %arg9[%c0_13, %c0_14], %20 {strides = array<i32>} : memref<128x128xf32, #tpu.memory_space<vmem>>, vector<128x128xf32>,
    } else {
    }
    %c128_i32 = arith.constant 128 : i32
    %8 = arith.muli %arg2, %c128_i32 : i32
    %9 = tpu.assume_multiple %8, 128 : i32
    %c0 = arith.constant 0 : index
    %c0_4 = arith.constant 0 : index
    %10 = vector.load %arg9[%c0, %c0_4] : memref<128x128xf32, #tpu.memory_space<vmem>>, vector<128x128xf32>
    %c0_5 = arith.constant 0 : index
    %11 = arith.index_cast %9 : i32 to index
    %12 = vector.load %arg3[%c0_5, %11] : memref<128x128xbf16, #tpu.memory_space<vmem>>, vector<128x128xbf16>
    %c0_6 = arith.constant 0 : index
    %c0_7 = arith.constant 0 : index
    %13 = vector.load %arg4[%c0_6, %c0_7] : memref<128x128xbf16, #tpu.memory_space<vmem>>, vector<128x128xbf16>
    %cst = arith.constant dense<0.000000e+00> : vector<128x128xf32>
    %14 = tpu.matmul %12, %13, %cst {dimension_numbers = #tpu.dot_dimension_numbers<[1], [0], [0], [1], [0, 0, 1, 1], [], []>} : vector<128x128xbf16>, vector<128x128xbf16>, vector<128x128xf32> -> vector<128x128xf32>
    %15 = arith.addf %10, %14 : vector<128x128xf32>
    %c0_8 = arith.constant 0 : index
    %c0_9 = arith.constant 0 : index
    %16 = vector.load %arg9[%c0_8, %c0_9] : memref<128x128xf32, #tpu.memory_space<vmem>>, vector<128x128xf32>
    tpu.vector_store %arg9[%c0_8, %c0_9], %15 {strides = array<i32>} : memref<128x128xf32, #tpu.memory_space<vmem>>, vector<128x128xf32>,
    %c0_i32_10 = arith.constant 0 : i32
    %17 = arith.cmpi eq, %arg2, %c0_i32_10 : i32
    %18 = arith.extui %17 : i1 to i32
    %c0_i32_11 = arith.constant 0 : i32
    %19 = arith.cmpi ne, %18, %c0_i32_11 : i32
    scf.if %19 {
      %20 = arith.cmpi eq, %arg0, %arg1 : i32
      %21 = arith.extui %20 : i1 to i32
      %c0_i32_12 = arith.constant 0 : i32
      %22 = arith.cmpi ne, %21, %c0_i32_12 : i32
      scf.if %22 {
        %c0_24 = arith.constant 0 : index
        %c0_25 = arith.constant 0 : index
        %33 = vector.load %arg9[%c0_24, %c0_25] : memref<128x128xf32, #tpu.memory_space<vmem>>, vector<128x128xf32>
        %34 = tpu.iota {dimensions = array<i32: 0>} : vector<128x128xi32>
        %35 = tpu.iota {dimensions = array<i32: 1>} : vector<128x128xi32>
        %36 = arith.cmpi eq, %34, %35 : vector<128x128xi32>
        %cst_26 = arith.constant 0.000000e+00 : f32
        %37 = vector.broadcast %cst_26 : f32 to vector<128x128xf32>
        %38 = arith.cmpf oeq, %33, %37 : vector<128x128xf32>
        %39 = arith.andi %36, %38 : vector<128x128xi1>
        %cst_27 = arith.constant 1.000000e+00 : f32
        %40 = vector.broadcast %cst_27 : f32 to vector<128x128xf32>
        %41 = arith.select %39, %40, %33 : vector<128x128xi1>, vector<128x128xf32>
        %c0_28 = arith.constant 0 : index
        %c0_29 = arith.constant 0 : index
        %42 = vector.load %arg9[%c0_28, %c0_29] : memref<128x128xf32, #tpu.memory_space<vmem>>, vector<128x128xf32>
        tpu.vector_store %arg9[%c0_28, %c0_29], %41 {strides = array<i32>} : memref<128x128xf32, #tpu.memory_space<vmem>>, vector<128x128xf32>,
      } else {
      }
      %c0_13 = arith.constant 0 : index
      %c0_14 = arith.constant 0 : index
      %23 = vector.load %arg10[%c0_13, %c0_14] : memref<128x128xf32, #tpu.memory_space<vmem>>, vector<128x128xf32>
      %c0_15 = arith.constant 0 : index
      %c0_16 = arith.constant 0 : index
      %24 = vector.load %arg9[%c0_15, %c0_16] : memref<128x128xf32, #tpu.memory_space<vmem>>, vector<128x128xf32>
      %25 = arith.truncf %24 : vector<128x128xf32> to vector<128x128xbf16>
      %c0_17 = arith.constant 0 : index
      %c0_18 = arith.constant 0 : index
      %26 = vector.load %arg5[%c0_17, %c0_18] : memref<128x128xbf16, #tpu.memory_space<vmem>>, vector<128x128xbf16>
      %cst_19 = arith.constant dense<0.000000e+00> : vector<128x128xf32>
      %27 = tpu.matmul %25, %26, %cst_19 {dimension_numbers = #tpu.dot_dimension_numbers<[1], [0], [0], [1], [0, 0, 1, 1], [], []>} : vector<128x128xbf16>, vector<128x128xbf16>, vector<128x128xf32> -> vector<128x128xf32>
      %28 = arith.addf %23, %27 : vector<128x128xf32>
      %c0_20 = arith.constant 0 : index
      %c0_21 = arith.constant 0 : index
      %29 = vector.load %arg10[%c0_20, %c0_21] : memref<128x128xf32, #tpu.memory_space<vmem>>, vector<128x128xf32>
      tpu.vector_store %arg10[%c0_20, %c0_21], %28 {strides = array<i32>} : memref<128x128xf32, #tpu.memory_space<vmem>>, vector<128x128xf32>,
      %c0_i32_22 = arith.constant 0 : i32
      %30 = arith.cmpi eq, %arg1, %c0_i32_22 : i32
      %31 = arith.extui %30 : i1 to i32
      %c0_i32_23 = arith.constant 0 : i32
      %32 = arith.cmpi ne, %31, %c0_i32_23 : i32
      scf.if %32 {
        %c0_24 = arith.constant 0 : index
        %c0_25 = arith.constant 0 : index
        %33 = vector.load %arg6[%c0_24, %c0_25] : memref<128x1xf32, #tpu.memory_space<vmem>>, vector<128x1xf32>
        %c0_26 = arith.constant 0 : index
        %c0_27 = arith.constant 0 : index
        %34 = vector.load %arg10[%c0_26, %c0_27] : memref<128x128xf32, #tpu.memory_space<vmem>>, vector<128x128xf32>
        %35 = vector.broadcast %33 : vector<128x1xf32> to vector<128x128xf32>
        %36 = arith.mulf %35, %34 : vector<128x128xf32>
        %c0_28 = arith.constant 0 : index
        %c0_29 = arith.constant 0 : index
        %37 = vector.load %arg7[%c0_28, %c0_29] : memref<1x128xf32, #tpu.memory_space<vmem>>, vector<1x128xf32>
        %38 = vector.broadcast %37 : vector<1x128xf32> to vector<128x128xf32>
        %39 = arith.addf %36, %38 : vector<128x128xf32>
        %cst_30 = arith.constant 0.000000e+00 : f32
        %40 = vector.broadcast %cst_30 : f32 to vector<128x128xf32>
        %41 = arith.maximumf %39, %40 : vector<128x128xf32>
        %c0_31 = arith.constant 0 : index
        %c0_32 = arith.constant 0 : index
        %42 = vector.load %arg8[%c0_31, %c0_32] : memref<128x128xf32, #tpu.memory_space<vmem>>, vector<128x128xf32>
        tpu.vector_store %arg8[%c0_31, %c0_32], %41 {strides = array<i32>} : memref<128x128xf32, #tpu.memory_space<vmem>>, vector<128x128xf32>,
      } else {
      }
    } else {
    }
    return
  }
  func.func @transform_0(%arg0: i32, %arg1: i32, %arg2: i32) -> (i32, i32) {
    %c0_i32 = arith.constant 0 : i32
    %c0_i32_0 = arith.constant 0 : i32
    return %arg0, %c0_i32 : i32, i32
  }
  func.func @transform_1(%arg0: i32, %arg1: i32, %arg2: i32) -> (i32, i32) {
    %c0_i32 = arith.constant 0 : i32
    return %arg2, %arg1 : i32, i32
  }
  func.func @transform_2(%arg0: i32, %arg1: i32, %arg2: i32) -> (i32, i32) {
    %c0_i32 = arith.constant 0 : i32
    %c0_i32_0 = arith.constant 0 : i32
    return %arg1, %c0_i32 : i32, i32
  }
  func.func @transform_3(%arg0: i32, %arg1: i32, %arg2: i32) -> (i32, i32) {
    %c0_i32 = arith.constant 0 : i32
    %c0_i32_0 = arith.constant 0 : i32
    return %arg0, %c0_i32 : i32, i32
  }
  func.func @transform_4(%arg0: i32, %arg1: i32, %arg2: i32) -> (i32, i32) {
    %c0_i32 = arith.constant 0 : i32
    %c0_i32_0 = arith.constant 0 : i32
    %c0_i32_1 = arith.constant 0 : i32
    return %c0_i32, %c0_i32_0 : i32, i32
  }
  func.func @transform_5(%arg0: i32, %arg1: i32, %arg2: i32) -> (i32, i32) {
    %c0_i32 = arith.constant 0 : i32
    %c0_i32_0 = arith.constant 0 : i32
    return %arg0, %c0_i32 : i32, i32
  }
}

</mosaic_0001>

<bundles_post_ra>
// kernel: _forward_jit.1
= control target key start
LH: loop header
LB: loop body
LE: loop exit
PB: predicated region body
PF: predicated region fallthrough
CT: control target
= control target key end

     0   :  { %v1035_v24 = vmov 0   ;;  %v363_v41 = vlaneseq  ;;  %s1327_s1 = inlined_call_operand.vmem [shape: bf16[128,128], index: 1, kind: input, shape index: {}]   ;;  %s1328_s0 = inlined_call_operand.vmem [shape: bf16[128,128], index: 0, kind: input, shape index: {}]   ;;  %s1329_s2 = inlined_call_operand.vmem [shape: bf16[128,128], index: 2, kind: input, shape index: {}]   ;;  %s1330_s3 = inlined_call_operand.vmem [shape: f32[128,1], index: 3, kind: input, shape index: {}]   ;;  %s1331_s4 = inlined_call_operand.vmem [shape: f32[1,128], index: 4, kind: input, shape index: {}]   ;;  %s1332_s5 = inlined_call_operand.vmem [shape: f32[128,128], index: 5, kind: output, shape index: {}]  }
   0x1   :  { %v1011_v0 = vld [vmem:[%s1327_s1 + $0x38] sm:$0xff]   ;;  %v1012_v1 = vld [vmem:[%s1327_s1 + $0x30] sm:$0xff]   ;;  %v1013_v2 = vld [vmem:[%s1327_s1 + $0x28] sm:$0xff]   ;;  %1010 = vset.pattern.permute.xlu1 %v1035_v24  ;;  %1009 = vset.pattern.permute.xlu0 %v1035_v24 }
   0x2   :  { %944 = vmatprep.subr.bf16.mxu0 %v1011_v0  ;;  %v1014_v3 = vld [vmem:[%s1327_s1 + $0x20] sm:$0xff]   ;;  %v1015_v5 = vld [vmem:[%s1327_s1 + $0x18] sm:$0xff]   ;;  %v1016_v6 = vld [vmem:[%s1327_s1 + $0x10] sm:$0xff]   ;;  %v1186_v42 = vshrl.u32 %v363_v41, 7  ;;  %v1190_v46 = vand.u32 127, %v363_v41 }
   0x3   :  { %945 = vmatpush3.bf16.msra.mxu0 %v1011_v0  ;;  %v1019_v4 = vld [vmem:[%s1328_s0] sm:$0xff]   ;;  %v1027_v7 = vld [vmem:[%s1329_s2 + $0x38] sm:$0xff]   ;;  %v1028_v8 = vld [vmem:[%s1329_s2 + $0x30] sm:$0xff]  }
   0x4   :  { %946 = vmatprep.subr.bf16.mxu0 %v1012_v1  ;;  %960 = vmatprep.mubr.bf16.mxu0 %v1019_v4  ;;  %v1017_v9 = vld [vmem:[%s1327_s1 + $0x8] sm:$0xff]   ;;  %v1018_v11 = vld [vmem:[%s1327_s1] sm:$0xff]   ;;  %v1031_v13 = vld [vmem:[%s1329_s2 + $0x18] sm:$0xff]   ;;  %v367_v43 = vadd.s32 24, %v1186_v42  ;;  %v366_v45 = vadd.s32 16, %v1186_v42  ;;  %v365_v47 = vadd.s32 8, %v1186_v42  ;;  %vm382_vm0 = vcmp.eq.s32.totalorder %v1186_v42, %v1190_v46 }
   0x5   :  { %976 = vmatprep.subr.bf16.mxu1 %v1027_v7  ;;  %v1029_v10 = vld [vmem:[%s1329_s2 + $0x28] sm:$0xff]   ;;  %v1030_v12 = vld [vmem:[%s1329_s2 + $0x20] sm:$0xff]   ;;  %v1021_v15 = vld [vmem:[%s1328_s0 + $0x10] sm:$0xff]   ;;  %v368_v53 = vadd.s32 32, %v1186_v42  ;;  %v371_v54 = vadd.s32 56, %v1186_v42  ;;  %v370_v57 = vadd.s32 48, %v1186_v42 }
   0x6   :  { %977 = vmatpush3.bf16.msra.mxu1 %v1027_v7  ;;  %v1020_v14 = vld [vmem:[%s1328_s0 + $0x8] sm:$0xff]   ;;  %v1022_v16 = vld [vmem:[%s1328_s0 + $0x18] sm:$0xff]   ;;  %v1023_v17 = vld [vmem:[%s1328_s0 + $0x20] sm:$0xff]   ;;  %vm385_vm2 = vcmp.eq.s32.totalorder %v367_v43, %v1190_v46  ;;  %vm384_vm3 = vcmp.eq.s32.totalorder %v366_v45, %v1190_v46  ;;  %vm383_vm6 = vcmp.eq.s32.totalorder %v365_v47, %v1190_v46  ;;  %v369_v60 = vadd.s32 40, %v1186_v42 }
   0x7   :  { %947 = vmatpush3.bf16.msra.mxu0 %v1012_v1  ;;  %978 = vmatprep.subr.bf16.mxu1 %v1028_v8  ;;  %v1024_v18 = vld [vmem:[%s1328_s0 + $0x28] sm:$0xff]   ;;  %v1025_v19 = vld [vmem:[%s1328_s0 + $0x30] sm:$0xff]   ;;  %v1026_v20 = vld [vmem:[%s1328_s0 + $0x38] sm:$0xff]   ;;  %vm386_vm12 = vcmp.eq.s32.totalorder %v368_v53, %v1190_v46  ;;  %vm389_vm14 = vcmp.eq.s32.totalorder %v371_v54, %v1190_v46  ;;  %vm388_vm15 = vcmp.eq.s32.totalorder %v370_v57, %v1190_v46 }
   0x8   :  { %948 = vmatprep.subr.bf16.mxu0 %v1013_v2  ;;  %v1032_v21 = vld [vmem:[%s1329_s2 + $0x10] sm:$0xff]   ;;  %v1033_v22 = vld [vmem:[%s1329_s2 + $0x8] sm:$0xff]   ;;  %v1034_v23 = vld [vmem:[%s1329_s2] sm:$0xff]  }
   0x9   :  { %v700_v25 = vld [vmem:[%s1330_s3 + $0x10] sm:$0xff]  ;;  %v698_v26 = vld [vmem:[%s1330_s3] sm:$0xff]  ;;  %v701_v27 = vld [vmem:[%s1330_s3 + $0x18] sm:$0xff] }
   0xa   :  { %979 = vmatpush3.bf16.msra.mxu1 %v1028_v8  ;;  %742 = vperm.xlu1 %1010, %v700_v25   ;;  %v699_v28 = vld [vmem:[%s1330_s3 + $0x8] sm:$0xff]  ;;  %v702_v30 = vld [vmem:[%s1330_s3 + $0x20] sm:$0xff]  ;;  %v705_v31 = vld [vmem:[%s1330_s3 + $0x38] sm:$0xff]  ;;  %v378_v25 = vadd.s32 112, %v1186_v42 }
   0xb   :  { %949 = vmatpush3.bf16.msra.mxu0 %v1013_v2  ;;  %980 = vmatprep.subr.bf16.mxu1 %v1029_v10  ;;  %v703_v29 = vld [vmem:[%s1330_s3 + $0x28] sm:$0xff]  ;;  %v704_v32 = vld [vmem:[%s1330_s3 + $0x30] sm:$0xff]  ;;  %v706_v34 = vld [vmem:[%s1330_s3 + $0x40] sm:$0xff] }
   0xc   :  { %950 = vmatprep.subr.bf16.mxu0 %v1014_v3  ;;  %732 = vperm.xlu0 %1009, %v698_v26   ;;  %v707_v33 = vld [vmem:[%s1330_s3 + $0x48] sm:$0xff]  ;;  %v709_v35 = vld [vmem:[%s1330_s3 + $0x58] sm:$0xff]  ;;  %v708_v36 = vld [vmem:[%s1330_s3 + $0x50] sm:$0xff] }
   0xd   :  { %v711_v37 = vld [vmem:[%s1330_s3 + $0x68] sm:$0xff]  ;;  %v710_v38 = vld [vmem:[%s1330_s3 + $0x60] sm:$0xff]  ;;  %v713_v39 = vld [vmem:[%s1330_s3 + $0x78] sm:$0xff] }
   0xe   :  { %981 = vmatpush3.bf16.msra.mxu1 %v1029_v10  ;;  %747 = vperm.xlu1 %1010, %v701_v27   ;;  %v712_v40 = vld [vmem:[%s1330_s3 + $0x70] sm:$0xff] }
   0xf   :  { %951 = vmatpush3.bf16.msra.mxu0 %v1014_v3  ;;  %982 = vmatprep.subr.bf16.mxu1 %v1030_v12 }
  0x10   :  { %952 = vmatprep.subr.bf16.mxu0 %v1015_v5  ;;  %737 = vperm.xlu0 %1009, %v699_v28   ;;  %v377_v28 = vadd.s32 104, %v1186_v42 }
  0x12   :  { %983 = vmatpush3.bf16.msra.mxu1 %v1030_v12  ;;  %757 = vperm.xlu1 %1010, %v703_v29   ;;  %v373_v12 = vadd.s32 72, %v1186_v42 }
  0x13   :  { %953 = vmatpush3.bf16.msra.mxu0 %v1015_v5  ;;  %984 = vmatprep.subr.bf16.mxu1 %v1031_v13  ;;  %v372_v5 = vadd.s32 64, %v1186_v42 }
  0x14   :  { %954 = vmatprep.subr.bf16.mxu0 %v1016_v6  ;;  %752 = vperm.xlu0 %1009, %v702_v30  }
  0x16   :  { %985 = vmatpush3.bf16.msra.mxu1 %v1031_v13  ;;  %767 = vperm.xlu1 %1010, %v705_v31  }
  0x17   :  { %955 = vmatpush3.bf16.msra.mxu0 %v1016_v6  ;;  %986 = vmatprep.subr.bf16.mxu1 %v1032_v21  ;;  %v375_v6 = vadd.s32 88, %v1186_v42 }
  0x18   :  { %956 = vmatprep.subr.bf16.mxu0 %v1017_v9  ;;  %762 = vperm.xlu0 %1009, %v704_v32  }
  0x1a   :  { %987 = vmatpush3.bf16.msra.mxu1 %v1032_v21  ;;  %777 = vperm.xlu1 %1010, %v707_v33   ;;  %v376_v21 = vadd.s32 96, %v1186_v42 }
  0x1b   :  { %957 = vmatpush3.bf16.msra.mxu0 %v1017_v9  ;;  %988 = vmatprep.subr.bf16.mxu1 %v1033_v22  ;;  %v374_v9 = vadd.s32 80, %v1186_v42 }
  0x1c   :  { %958 = vmatprep.subr.bf16.mxu0 %v1018_v11  ;;  %772 = vperm.xlu0 %1009, %v706_v34  }
  0x1e   :  { %989 = vmatpush3.bf16.msra.mxu1 %v1033_v22  ;;  %787 = vperm.xlu1 %1010, %v709_v35   ;;  %v379_v22 = vadd.s32 120, %v1186_v42 }
  0x1f   :  { %959 = vmatpush3.bf16.msra.mxu0 %v1018_v11  ;;  %990 = vmatprep.subr.bf16.mxu1 %v1034_v23 }
  0x20   :  { %782 = vperm.xlu0 %1009, %v708_v36  }
  0x22   :  { %961 = vmatmul.mubr.bf16.vlgmr.msra.gmra.mxu0 %v1020_v14  ;;  %991 = vmatpush3.bf16.msra.mxu1 %v1034_v23 }
  0x23   :  { %964 = vmatprep.mubr.bf16.mxu0 %v1021_v15  ;;  %797 = vperm.xlu1 %1010, %v711_v37  }
  0x24   :  { %792 = vperm.xlu0 %1009, %v710_v38  }
  0x27   :  { %807 = vperm.xlu1 %1010, %v713_v39  }
  0x28   :  { %802 = vperm.xlu0 %1009, %v712_v40  }
  0x2a   :  { %965 = vmatmul.mubr.bf16.gmra.mxu0 %v1022_v16 }
  0x2b   :  { %968 = vmatprep.mubr.bf16.mxu0 %v1023_v17 }
  0x32   :  { %969 = vmatmul.mubr.bf16.gmra.mxu0 %v1024_v18 }
  0x33   :  { %972 = vmatprep.mubr.bf16.mxu0 %v1025_v19 }
  0x3a   :  { %973 = vmatmul.mubr.bf16.gmra.mxu0 %v1026_v20 }
  0x85   :  { %v743_v42 = vpop.permute.xlu1 %742 }
  0x87   :  { %v733_v41 = vpop.permute.xlu0 %732 }
  0x8b   :  { %v738_v43 = vpop.permute.xlu0 %737 }
  0x8f   :  { %v753_v45 = vpop.permute.xlu0 %752 }
  0xe2   :  { %v962_v44 = vpop.f32.mrf.mxu0 }
  0xe3   :  { %vm400_vm4 = vcmp.eq.f32.partialorder %v962_v44, 0.0 }
  0xe4   :  { %v245_v48 = vpop.f32.mrf.mxu0  ;;  %vm416_vm9 = vmand %vm384_vm3, %vm400_vm4  ;;  %vm387_vm3 = vcmp.eq.s32.totalorder %v369_v60, %v1190_v46 }
  0xe5   :  { %vm398_vm1 = vcmp.eq.f32.partialorder %v245_v48, 0.0  ;;  %v432_v61 = vsel %vm416_vm9, 1.0, %v962_v44  ;;  %v748_v44 = vpop.permute.xlu1 %747 }
  0xe6   :  { %v963_v49 = vpop.f32.mrf.mxu0  ;;  %vm1198_vm7 = vmand %vm382_vm0, %vm398_vm1 }
  0xe7   :  { %vm401_vm5 = vcmp.eq.f32.partialorder %v963_v49, 0.0  ;;  %v430_v58 = vsel %vm1198_vm7, 1.0, %v245_v48 }
  0xe8   :  { %vm1202_vm8 = vmand %vm385_vm2, %vm401_vm5  ;;  %v248_v52 = vpop.f32.mrf.mxu0 }
  0xe9   :  { %vm399_vm10 = vcmp.eq.f32.partialorder %v248_v52, 0.0  ;;  %v433_v55 = vsel %vm1202_vm8, 1.0, %v963_v49  ;;  %vm390_vm8 = vcmp.eq.s32.totalorder %v372_v5, %v1190_v46  ;;  %v758_v47 = vpop.permute.xlu1 %757  ;;  %v1261_v49 = vld [vmem:[%s1331_s4] ss:$0 sm:$0xff] }
  0xea   :  { %v966_v56 = vpop.f32.mrf.mxu0  ;;  %vm415_vm11 = vmand %vm383_vm6, %vm399_vm10  ;;  %v495_v0 = vpack.c.bf16 %v433_v55, %v432_v61  ;;  %vm393_vm10 = vcmp.eq.s32.totalorder %v375_v6, %v1190_v46 }
  0xeb   :  { %v431_v59 = vsel %vm415_vm11, 1.0, %v248_v52  ;;  %vm404_vm0 = vcmp.eq.f32.partialorder %v966_v56, 0.0  ;;  %vm392_vm11 = vcmp.eq.s32.totalorder %v374_v9, %v1190_v46 }
  0xec   :  { %v261_v62 = vpop.f32.mrf.mxu0  ;;  %v494_v63 = vpack.c.bf16 %v431_v59, %v430_v58  ;;  %vm420_vm5 = vmand %vm388_vm15, %vm404_vm0  ;;  %vm391_vm15 = vcmp.eq.s32.totalorder %v373_v12, %v1190_v46 }
  0xed   :  { %vm402_vm13 = vcmp.eq.f32.partialorder %v261_v62, 0.0  ;;  %v436_v13 = vsel %vm420_vm5, 1.0, %v966_v56  ;;  %v768_v54 = vpop.permute.xlu1 %767 }
  0xee   :  { %v967_v1 = vpop.f32.mrf.mxu0  ;;  %992 = vmatprep.mubr.bf16.mxu1 %v494_v63  ;;  %vm1217_vm1 = vmand %vm386_vm12, %vm402_vm13 }
  0xef   :  { %vm405_vm2 = vcmp.eq.f32.partialorder %v967_v1, 0.0  ;;  %993 = vmatmul.mubr.bf16.vlgmr.msra.gmra.mxu1 %v495_v0  ;;  %v434_v10 = vsel %vm1217_vm1, 1.0, %v261_v62 }
  0xf0   :  { %vm1222_vm4 = vmand %vm389_vm14, %vm405_vm2  ;;  %v264_v4 = vpop.f32.mrf.mxu0 }
  0xf1   :  { %vm403_vm6 = vcmp.eq.f32.partialorder %v264_v4, 0.0  ;;  %v437_v7 = vsel %vm1222_vm4, 1.0, %v967_v1  ;;  %vm394_vm4 = vcmp.eq.s32.totalorder %v376_v21, %v1190_v46 }
  0xf2   :  { %vm419_vm7 = vmand %vm387_vm3, %vm403_vm6  ;;  %v970_v8 = vpop.f32.mrf.mxu0  ;;  %v497_v16 = vpack.c.bf16 %v437_v7, %v436_v13  ;;  %vm397_vm6 = vcmp.eq.s32.totalorder %v379_v22, %v1190_v46 }
  0xf3   :  { %v435_v11 = vsel %vm419_vm7, 1.0, %v264_v4  ;;  %vm408_vm12 = vcmp.eq.f32.partialorder %v970_v8, 0.0  ;;  %vm396_vm7 = vcmp.eq.s32.totalorder %v378_v25, %v1190_v46  ;;  %v778_v4 = vpop.permute.xlu1 %777 }
  0xf4   :  { %v496_v14 = vpack.c.bf16 %v435_v11, %v434_v10  ;;  %v277_v15 = vpop.f32.mrf.mxu0  ;;  %vm424_vm1 = vmand %vm392_vm11, %vm408_vm12  ;;  %vm395_vm11 = vcmp.eq.s32.totalorder %v377_v28, %v1190_v46  ;;  %v763_v46 = vpop.permute.xlu0 %762 }
  0xf5   :  { %vm406_vm9 = vcmp.eq.f32.partialorder %v277_v15, 0.0  ;;  %v440_v29 = vsel %vm424_vm1, 1.0, %v970_v8 }
  0xf6   :  { %v971_v17 = vpop.f32.mrf.mxu0  ;;  %996 = vmatprep.mubr.bf16.mxu1 %v496_v14  ;;  %vm1237_vm13 = vmand %vm390_vm8, %vm406_vm9 }
  0xf7   :  { %vm409_vm14 = vcmp.eq.f32.partialorder %v971_v17, 0.0  ;;  %997 = vmatmul.mubr.bf16.gmra.mxu1 %v497_v16  ;;  %v438_v26 = vsel %vm1237_vm13, 1.0, %v277_v15  ;;  %v788_v18 = vpop.permute.xlu1 %787 }
  0xf8   :  { %vm1242_vm0 = vmand %vm393_vm10, %vm409_vm14  ;;  %v280_v20 = vpop.f32.mrf.mxu0  ;;  %v773_v59 = vpop.permute.xlu0 %772 }
  0xf9   :  { %vm407_vm2 = vcmp.eq.f32.partialorder %v280_v20, 0.0  ;;  %v441_v23 = vsel %vm1242_vm0, 1.0, %v971_v17 }
  0xfa   :  { %vm423_vm3 = vmand %vm391_vm15, %vm407_vm2  ;;  %v974_v24 = vpop.f32.mrf.mxu0  ;;  %v499_v32 = vpack.c.bf16 %v441_v23, %v440_v29 }
  0xfb   :  { %v439_v27 = vsel %vm423_vm3, 1.0, %v280_v20  ;;  %vm412_vm8 = vcmp.eq.f32.partialorder %v974_v24, 0.0 }
  0xfc   :  { %v498_v30 = vpack.c.bf16 %v439_v27, %v438_v26  ;;  %v293_v31 = vpop.f32.mrf.mxu0  ;;  %vm428_vm13 = vmand %vm396_vm7, %vm412_vm8  ;;  %v783_v9 = vpop.permute.xlu0 %782 }
  0xfd   :  { %vm410_vm5 = vcmp.eq.f32.partialorder %v293_v31, 0.0  ;;  %v444_v38 = vsel %vm428_vm13, 1.0, %v974_v24 }
  0xfe   :  { %v975_v33 = vpop.f32.mrf.mxu0  ;;  %1000 = vmatprep.mubr.bf16.mxu1 %v498_v30  ;;  %vm426_vm9 = vmand %vm394_vm4, %vm410_vm5 }
  0xff   :  { %vm413_vm10 = vcmp.eq.f32.partialorder %v975_v33, 0.0  ;;  %1001 = vmatmul.mubr.bf16.gmra.mxu1 %v499_v32  ;;  %v442_v36 = vsel %vm426_vm9, 1.0, %v293_v31  ;;  %v798_v32 = vpop.permute.xlu1 %797 }
 0x100   :  { %vm429_vm12 = vmand %vm397_vm6, %vm413_vm10  ;;  %v296_v34 = vpop.f32.mrf.mxu0  ;;  %v793_v23 = vpop.permute.xlu0 %792 }
 0x101   :  { %vm411_vm14 = vcmp.eq.f32.partialorder %v296_v34, 0.0  ;;  %v445_v35 = vsel %vm429_vm12, 1.0, %v975_v33 }
 0x102   :  { %vm427_vm15 = vmand %vm395_vm11, %vm411_vm14  ;;  %v501_v40 = vpack.c.bf16 %v445_v35, %v444_v38 }
 0x103   :  { %v443_v37 = vsel %vm427_vm15, 1.0, %v296_v34 }
 0x104   :  { %v500_v39 = vpack.c.bf16 %v443_v37, %v442_v36  ;;  %v803_v37 = vpop.permute.xlu0 %802 }
 0x106   :  { %1004 = vmatprep.mubr.bf16.mxu1 %v500_v39 }
 0x107   :  { %1005 = vmatmul.mubr.bf16.gmra.mxu1 %v501_v40 }
 0x1af   :  { %v994_v48 = vpop.f32.mrf.mxu1 }
 0x1b0   :  { %v812_v50 = vmul.f32 %v994_v48, %v743_v42 }
 0x1b1   :  { %v600_v51 = vpop.f32.mrf.mxu1 }
 0x1b2   :  { %v835_v52 = vadd.f32 %v1261_v49, %v812_v50  ;;  %v810_v53 = vmul.f32 %v733_v41, %v600_v51 }
 0x1b3   :  { %v995_v55 = vpop.f32.mrf.mxu1 }
 0x1b4   :  { %v851_v56 = vmax.f32 %v835_v52, 0.0  ;;  %v833_v57 = vadd.f32 %v1261_v49, %v810_v53  ;;  %v813_v58 = vmul.f32 %v995_v55, %v748_v44 }
 0x1b5   :  { %v603_v60 = vpop.f32.mrf.mxu1 }
 0x1b6   :  { %867 = vst [vmem:[%s1332_s5 + $0x10] sm:$0xff] %v851_v56  ;;  %v849_v61 = vmax.f32 %v833_v57, 0.0  ;;  %v836_v62 = vadd.f32 %v1261_v49, %v813_v58  ;;  %v811_v63 = vmul.f32 %v738_v43, %v603_v60 }
 0x1b7   :  { %v998_v0 = vpop.f32.mrf.mxu1 }
 0x1b8   :  { %865 = vst [vmem:[%s1332_s5] sm:$0xff] %v849_v61  ;;  %v852_v1 = vmax.f32 %v836_v62, 0.0  ;;  %v834_v2 = vadd.f32 %v1261_v49, %v811_v63  ;;  %v816_v3 = vmul.f32 %v998_v0, %v763_v46 }
 0x1b9   :  { %v616_v5 = vpop.f32.mrf.mxu1 }
 0x1ba   :  { %868 = vst [vmem:[%s1332_s5 + $0x18] sm:$0xff] %v852_v1  ;;  %v850_v6 = vmax.f32 %v834_v2, 0.0  ;;  %v839_v7 = vadd.f32 %v1261_v49, %v816_v3  ;;  %v814_v8 = vmul.f32 %v753_v45, %v616_v5 }
 0x1bb   :  { %v999_v10 = vpop.f32.mrf.mxu1 }
 0x1bc   :  { %866 = vst [vmem:[%s1332_s5 + $0x8] sm:$0xff] %v850_v6  ;;  %v855_v11 = vmax.f32 %v839_v7, 0.0  ;;  %v837_v12 = vadd.f32 %v1261_v49, %v814_v8  ;;  %v817_v13 = vmul.f32 %v999_v10, %v768_v54 }
 0x1bd   :  { %v619_v14 = vpop.f32.mrf.mxu1 }
 0x1be   :  { %871 = vst [vmem:[%s1332_s5 + $0x30] sm:$0xff] %v855_v11  ;;  %v853_v15 = vmax.f32 %v837_v12, 0.0  ;;  %v840_v16 = vadd.f32 %v1261_v49, %v817_v13  ;;  %v815_v17 = vmul.f32 %v758_v47, %v619_v14  ;;  %v808_v47 = vpop.permute.xlu1 %807 }
 0x1bf   :  { %v1002_v19 = vpop.f32.mrf.mxu1 }
 0x1c0   :  { %869 = vst [vmem:[%s1332_s5 + $0x20] sm:$0xff] %v853_v15  ;;  %v856_v20 = vmax.f32 %v840_v16, 0.0  ;;  %v838_v21 = vadd.f32 %v1261_v49, %v815_v17  ;;  %v820_v22 = vmul.f32 %v1002_v19, %v783_v9 }
 0x1c1   :  { %v632_v24 = vpop.f32.mrf.mxu1 }
 0x1c2   :  { %872 = vst [vmem:[%s1332_s5 + $0x38] sm:$0xff] %v856_v20  ;;  %v854_v25 = vmax.f32 %v838_v21, 0.0  ;;  %v843_v26 = vadd.f32 %v1261_v49, %v820_v22  ;;  %v818_v27 = vmul.f32 %v773_v59, %v632_v24 }
 0x1c3   :  { %v1003_v28 = vpop.f32.mrf.mxu1 }
 0x1c4   :  { %870 = vst [vmem:[%s1332_s5 + $0x28] sm:$0xff] %v854_v25  ;;  %v859_v29 = vmax.f32 %v843_v26, 0.0  ;;  %v841_v30 = vadd.f32 %v1261_v49, %v818_v27  ;;  %v821_v31 = vmul.f32 %v1003_v28, %v788_v18 }
 0x1c5   :  { %v635_v33 = vpop.f32.mrf.mxu1 }
 0x1c6   :  { %875 = vst [vmem:[%s1332_s5 + $0x50] sm:$0xff] %v859_v29  ;;  %v857_v34 = vmax.f32 %v841_v30, 0.0  ;;  %v844_v35 = vadd.f32 %v1261_v49, %v821_v31  ;;  %v819_v36 = vmul.f32 %v778_v4, %v635_v33 }
 0x1c7   :  { %v1006_v38 = vpop.f32.mrf.mxu1 }
 0x1c8   :  { %873 = vst [vmem:[%s1332_s5 + $0x40] sm:$0xff] %v857_v34  ;;  %v860_v39 = vmax.f32 %v844_v35, 0.0  ;;  %v842_v40 = vadd.f32 %v1261_v49, %v819_v36  ;;  %v824_v41 = vmul.f32 %v1006_v38, %v803_v37 }
 0x1c9   :  { %v648_v42 = vpop.f32.mrf.mxu1 }
 0x1ca   :  { %876 = vst [vmem:[%s1332_s5 + $0x58] sm:$0xff] %v860_v39  ;;  %v858_v43 = vmax.f32 %v842_v40, 0.0  ;;  %v847_v44 = vadd.f32 %v1261_v49, %v824_v41  ;;  %v822_v45 = vmul.f32 %v793_v23, %v648_v42 }
 0x1cb   :  { %v1007_v46 = vpop.f32.mrf.mxu1 }
 0x1cc   :  { %874 = vst [vmem:[%s1332_s5 + $0x48] sm:$0xff] %v858_v43  ;;  %v863_v48 = vmax.f32 %v847_v44, 0.0  ;;  %v845_v50 = vadd.f32 %v1261_v49, %v822_v45  ;;  %v825_v51 = vmul.f32 %v1007_v46, %v808_v47 }
 0x1cd   :  { %v651_v52 = vpop.f32.mrf.mxu1 }
 0x1ce   :  { %879 = vst [vmem:[%s1332_s5 + $0x70] sm:$0xff] %v863_v48  ;;  %v861_v53 = vmax.f32 %v845_v50, 0.0  ;;  %v848_v54 = vadd.f32 %v1261_v49, %v825_v51  ;;  %v823_v55 = vmul.f32 %v798_v32, %v651_v52 }
 0x1d0   :  { %877 = vst [vmem:[%s1332_s5 + $0x60] sm:$0xff] %v861_v53  ;;  %v864_v56 = vmax.f32 %v848_v54, 0.0  ;;  %v846_v57 = vadd.f32 %v1261_v49, %v823_v55 }
 0x1d2   :  { %880 = vst [vmem:[%s1332_s5 + $0x78] sm:$0xff] %v864_v56  ;;  %v862_v58 = vmax.f32 %v846_v57, 0.0 }
 0x1d4   :  { %878 = vst [vmem:[%s1332_s5 + $0x68] sm:$0xff] %v862_v58 }

// kernel: _forward_jit.1
= control target key start
LH: loop header
LB: loop body
LE: loop exit
PB: predicated region body
PF: predicated region fallthrough
CT: control target
= control target key end

     0   :  { %v1035_v24 = vmov 0   ;;  %v363_v41 = vlaneseq  ;;  %s1327_s1 = inlined_call_operand.vmem [shape: bf16[128,128], index: 1, kind: input, shape index: {}]   ;;  %s1328_s0 = inlined_call_operand.vmem [shape: bf16[128,128], index: 0, kind: input, shape index: {}]   ;;  %s1329_s2 = inlined_call_operand.vmem [shape: bf16[128,128], index: 2, kind: input, shape index: {}]   ;;  %s1330_s3 = inlined_call_operand.vmem [shape: f32[128,1], index: 3, kind: input, shape index: {}]   ;;  %s1331_s4 = inlined_call_operand.vmem [shape: f32[1,128], index: 4, kind: input, shape index: {}]   ;;  %s1332_s5 = inlined_call_operand.vmem [shape: f32[128,128], index: 5, kind: output, shape index: {}]  }
   0x1   :  { %v1011_v0 = vld [vmem:[%s1327_s1 + $0x38] sm:$0xff]   ;;  %v1012_v1 = vld [vmem:[%s1327_s1 + $0x30] sm:$0xff]   ;;  %v1013_v2 = vld [vmem:[%s1327_s1 + $0x28] sm:$0xff]   ;;  %1010 = vset.pattern.permute.xlu1 %v1035_v24  ;;  %1009 = vset.pattern.permute.xlu0 %v1035_v24 }
   0x2   :  { %944 = vmatprep.subr.bf16.mxu0 %v1011_v0  ;;  %v1014_v3 = vld [vmem:[%s1327_s1 + $0x20] sm:$0xff]   ;;  %v1015_v5 = vld [vmem:[%s1327_s1 + $0x18] sm:$0xff]   ;;  %v1016_v6 = vld [vmem:[%s1327_s1 + $0x10] sm:$0xff]   ;;  %v1186_v42 = vshrl.u32 %v363_v41, 7  ;;  %v1190_v46 = vand.u32 127, %v363_v41 }
   0x3   :  { %945 = vmatpush3.bf16.msra.mxu0 %v1011_v0  ;;  %v1019_v4 = vld [vmem:[%s1328_s0] sm:$0xff]   ;;  %v1027_v7 = vld [vmem:[%s1329_s2 + $0x38] sm:$0xff]   ;;  %v1028_v8 = vld [vmem:[%s1329_s2 + $0x30] sm:$0xff]  }
   0x4   :  { %946 = vmatprep.subr.bf16.mxu0 %v1012_v1  ;;  %960 = vmatprep.mubr.bf16.mxu0 %v1019_v4  ;;  %v1017_v9 = vld [vmem:[%s1327_s1 + $0x8] sm:$0xff]   ;;  %v1018_v11 = vld [vmem:[%s1327_s1] sm:$0xff]   ;;  %v1031_v13 = vld [vmem:[%s1329_s2 + $0x18] sm:$0xff]   ;;  %v367_v43 = vadd.s32 24, %v1186_v42  ;;  %v366_v45 = vadd.s32 16, %v1186_v42  ;;  %v365_v47 = vadd.s32 8, %v1186_v42  ;;  %vm382_vm0 = vcmp.eq.s32.totalorder %v1186_v42, %v1190_v46 }
   0x5   :  { %976 = vmatprep.subr.bf16.mxu1 %v1027_v7  ;;  %v1029_v10 = vld [vmem:[%s1329_s2 + $0x28] sm:$0xff]   ;;  %v1030_v12 = vld [vmem:[%s1329_s2 + $0x20] sm:$0xff]   ;;  %v1021_v15 = vld [vmem:[%s1328_s0 + $0x10] sm:$0xff]   ;;  %v368_v53 = vadd.s32 32, %v1186_v42  ;;  %v371_v54 = vadd.s32 56, %v1186_v42  ;;  %v370_v57 = vadd.s32 48, %v1186_v42 }
   0x6   :  { %977 = vmatpush3.bf16.msra.mxu1 %v1027_v7  ;;  %v1020_v14 = vld [vmem:[%s1328_s0 + $0x8] sm:$0xff]   ;;  %v1022_v16 = vld [vmem:[%s1328_s0 + $0x18] sm:$0xff]   ;;  %v1023_v17 = vld [vmem:[%s1328_s0 + $0x20] sm:$0xff]   ;;  %vm385_vm2 = vcmp.eq.s32.totalorder %v367_v43, %v1190_v46  ;;  %vm384_vm3 = vcmp.eq.s32.totalorder %v366_v45, %v1190_v46  ;;  %vm383_vm6 = vcmp.eq.s32.totalorder %v365_v47, %v1190_v46  ;;  %v369_v60 = vadd.s32 40, %v1186_v42 }
   0x7   :  { %947 = vmatpush3.bf16.msra.mxu0 %v1012_v1  ;;  %978 = vmatprep.subr.bf16.mxu1 %v1028_v8  ;;  %v1024_v18 = vld [vmem:[%s1328_s0 + $0x28] sm:$0xff]   ;;  %v1025_v19 = vld [vmem:[%s1328_s0 + $0x30] sm:$0xff]   ;;  %v1026_v20 = vld [vmem:[%s1328_s0 + $0x38] sm:$0xff]   ;;  %vm386_vm12 = vcmp.eq.s32.totalorder %v368_v53, %v1190_v46  ;;  %vm389_vm14 = vcmp.eq.s32.totalorder %v371_v54, %v1190_v46  ;;  %vm388_vm15 = vcmp.eq.s32.totalorder %v370_v57, %v1190_v46 }
   0x8   :  { %948 = vmatprep.subr.bf16.mxu0 %v1013_v2  ;;  %v1032_v21 = vld [vmem:[%s1329_s2 + $0x10] sm:$0xff]   ;;  %v1033_v22 = vld [vmem:[%s1329_s2 + $0x8] sm:$0xff]   ;;  %v1034_v23 = vld [vmem:[%s1329_s2] sm:$0xff]  }
   0x9   :  { %v700_v25 = vld [vmem:[%s1330_s3 + $0x10] sm:$0xff]  ;;  %v698_v26 = vld [vmem:[%s1330_s3] sm:$0xff]  ;;  %v701_v27 = vld [vmem:[%s1330_s3 + $0x18] sm:$0xff] }
   0xa   :  { %979 = vmatpush3.bf16.msra.mxu1 %v1028_v8  ;;  %742 = vperm.xlu1 %1010, %v700_v25   ;;  %v699_v28 = vld [vmem:[%s1330_s3 + $0x8] sm:$0xff]  ;;  %v702_v30 = vld [vmem:[%s1330_s3 + $0x20] sm:$0xff]  ;;  %v705_v31 = vld [vmem:[%s1330_s3 + $0x38] sm:$0xff]  ;;  %v378_v25 = vadd.s32 112, %v1186_v42 }
   0xb   :  { %949 = vmatpush3.bf16.msra.mxu0 %v1013_v2  ;;  %980 = vmatprep.subr.bf16.mxu1 %v1029_v10  ;;  %v703_v29 = vld [vmem:[%s1330_s3 + $0x28] sm:$0xff]  ;;  %v704_v32 = vld [vmem:[%s1330_s3 + $0x30] sm:$0xff]  ;;  %v706_v34 = vld [vmem:[%s1330_s3 + $0x40] sm:$0xff] }
   0xc   :  { %950 = vmatprep.subr.bf16.mxu0 %v1014_v3  ;;  %732 = vperm.xlu0 %1009, %v698_v26   ;;  %v707_v33 = vld [vmem:[%s1330_s3 + $0x48] sm:$0xff]  ;;  %v709_v35 = vld [vmem:[%s1330_s3 + $0x58] sm:$0xff]  ;;  %v708_v36 = vld [vmem:[%s1330_s3 + $0x50] sm:$0xff] }
   0xd   :  { %v711_v37 = vld [vmem:[%s1330_s3 + $0x68] sm:$0xff]  ;;  %v710_v38 = vld [vmem:[%s1330_s3 + $0x60] sm:$0xff]  ;;  %v713_v39 = vld [vmem:[%s1330_s3 + $0x78] sm:$0xff] }
   0xe   :  { %981 = vmatpush3.bf16.msra.mxu1 %v1029_v10  ;;  %747 = vperm.xlu1 %1010, %v701_v27   ;;  %v712_v40 = vld [vmem:[%s1330_s3 + $0x70] sm:$0xff] }
   0xf   :  { %951 = vmatpush3.bf16.msra.mxu0 %v1014_v3  ;;  %982 = vmatprep.subr.bf16.mxu1 %v1030_v12 }
  0x10   :  { %952 = vmatprep.subr.bf16.mxu0 %v1015_v5  ;;  %737 = vperm.xlu0 %1009, %v699_v28   ;;  %v377_v28 = vadd.s32 104, %v1186_v42 }
  0x12   :  { %983 = vmatpush3.bf16.msra.mxu1 %v1030_v12  ;;  %757 = vperm.xlu1 %1010, %v703_v29   ;;  %v373_v12 = vadd.s32 72, %v1186_v42 }
  0x13   :  { %953 = vmatpush3.bf16.msra.mxu0 %v1015_v5  ;;  %984 = vmatprep.subr.bf16.mxu1 %v1031_v13  ;;  %v372_v5 = vadd.s32 64, %v1186_v42 }
  0x14   :  { %954 = vmatprep.subr.bf16.mxu0 %v1016_v6  ;;  %752 = vperm.xlu0 %1009, %v702_v30  }
  0x16   :  { %985 = vmatpush3.bf16.msra.mxu1 %v1031_v13  ;;  %767 = vperm.xlu1 %1010, %v705_v31  }
  0x17   :  { %955 = vmatpush3.bf16.msra.mxu0 %v1016_v6  ;;  %986 = vmatprep.subr.bf16.mxu1 %v1032_v21  ;;  %v375_v6 = vadd.s32 88, %v1186_v42 }
  0x18   :  { %956 = vmatprep.subr.bf16.mxu0 %v1017_v9  ;;  %762 = vperm.xlu0 %1009, %v704_v32  }
  0x1a   :  { %987 = vmatpush3.bf16.msra.mxu1 %v1032_v21  ;;  %777 = vperm.xlu1 %1010, %v707_v33   ;;  %v376_v21 = vadd.s32 96, %v1186_v42 }
  0x1b   :  { %957 = vmatpush3.bf16.msra.mxu0 %v1017_v9  ;;  %988 = vmatprep.subr.bf16.mxu1 %v1033_v22  ;;  %v374_v9 = vadd.s32 80, %v1186_v42 }
  0x1c   :  { %958 = vmatprep.subr.bf16.mxu0 %v1018_v11  ;;  %772 = vperm.xlu0 %1009, %v706_v34  }
  0x1e   :  { %989 = vmatpush3.bf16.msra.mxu1 %v1033_v22  ;;  %787 = vperm.xlu1 %1010, %v709_v35   ;;  %v379_v22 = vadd.s32 120, %v1186_v42 }
  0x1f   :  { %959 = vmatpush3.bf16.msra.mxu0 %v1018_v11  ;;  %990 = vmatprep.subr.bf16.mxu1 %v1034_v23 }
  0x20   :  { %782 = vperm.xlu0 %1009, %v708_v36  }
  0x22   :  { %961 = vmatmul.mubr.bf16.vlgmr.msra.gmra.mxu0 %v1020_v14  ;;  %991 = vmatpush3.bf16.msra.mxu1 %v1034_v23 }
  0x23   :  { %964 = vmatprep.mubr.bf16.mxu0 %v1021_v15  ;;  %797 = vperm.xlu1 %1010, %v711_v37  }
  0x24   :  { %792 = vperm.xlu0 %1009, %v710_v38  }
  0x27   :  { %807 = vperm.xlu1 %1010, %v713_v39  }
  0x28   :  { %802 = vperm.xlu0 %1009, %v712_v40  }
  0x2a   :  { %965 = vmatmul.mubr.bf16.gmra.mxu0 %v1022_v16 }
  0x2b   :  { %968 = vmatprep.mubr.bf16.mxu0 %v1023_v17 }
  0x32   :  { %969 = vmatmul.mubr.bf16.gmra.mxu0 %v1024_v18 }
  0x33   :  { %972 = vmatprep.mubr.bf16.mxu0 %v1025_v19 }
  0x3a   :  { %973 = vmatmul.mubr.bf16.gmra.mxu0 %v1026_v20 }
  0x85   :  { %v743_v42 = vpop.permute.xlu1 %742 }
  0x87   :  { %v733_v41 = vpop.permute.xlu0 %732 }
  0x8b   :  { %v738_v43 = vpop.permute.xlu0 %737 }
  0x8f   :  { %v753_v45 = vpop.permute.xlu0 %752 }
  0xe2   :  { %v962_v44 = vpop.f32.mrf.mxu0 }
  0xe3   :  { %vm400_vm4 = vcmp.eq.f32.partialorder %v962_v44, 0.0 }
  0xe4   :  { %v245_v48 = vpop.f32.mrf.mxu0  ;;  %vm416_vm9 = vmand %vm384_vm3, %vm400_vm4  ;;  %vm387_vm3 = vcmp.eq.s32.totalorder %v369_v60, %v1190_v46 }
  0xe5   :  { %vm398_vm1 = vcmp.eq.f32.partialorder %v245_v48, 0.0  ;;  %v432_v61 = vsel %vm416_vm9, 1.0, %v962_v44  ;;  %v748_v44 = vpop.permute.xlu1 %747 }
  0xe6   :  { %v963_v49 = vpop.f32.mrf.mxu0  ;;  %vm1198_vm7 = vmand %vm382_vm0, %vm398_vm1 }
  0xe7   :  { %vm401_vm5 = vcmp.eq.f32.partialorder %v963_v49, 0.0  ;;  %v430_v58 = vsel %vm1198_vm7, 1.0, %v245_v48 }
  0xe8   :  { %vm1202_vm8 = vmand %vm385_vm2, %vm401_vm5  ;;  %v248_v52 = vpop.f32.mrf.mxu0 }
  0xe9   :  { %vm399_vm10 = vcmp.eq.f32.partialorder %v248_v52, 0.0  ;;  %v433_v55 = vsel %vm1202_vm8, 1.0, %v963_v49  ;;  %vm390_vm8 = vcmp.eq.s32.totalorder %v372_v5, %v1190_v46  ;;  %v758_v47 = vpop.permute.xlu1 %757  ;;  %v1261_v49 = vld [vmem:[%s1331_s4] ss:$0 sm:$0xff] }
  0xea   :  { %v966_v56 = vpop.f32.mrf.mxu0  ;;  %vm415_vm11 = vmand %vm383_vm6, %vm399_vm10  ;;  %v495_v0 = vpack.c.bf16 %v433_v55, %v432_v61  ;;  %vm393_vm10 = vcmp.eq.s32.totalorder %v375_v6, %v1190_v46 }
  0xeb   :  { %v431_v59 = vsel %vm415_vm11, 1.0, %v248_v52  ;;  %vm404_vm0 = vcmp.eq.f32.partialorder %v966_v56, 0.0  ;;  %vm392_vm11 = vcmp.eq.s32.totalorder %v374_v9, %v1190_v46 }
  0xec   :  { %v261_v62 = vpop.f32.mrf.mxu0  ;;  %v494_v63 = vpack.c.bf16 %v431_v59, %v430_v58  ;;  %vm420_vm5 = vmand %vm388_vm15, %vm404_vm0  ;;  %vm391_vm15 = vcmp.eq.s32.totalorder %v373_v12, %v1190_v46 }
  0xed   :  { %vm402_vm13 = vcmp.eq.f32.partialorder %v261_v62, 0.0  ;;  %v436_v13 = vsel %vm420_vm5, 1.0, %v966_v56  ;;  %v768_v54 = vpop.permute.xlu1 %767 }
  0xee   :  { %v967_v1 = vpop.f32.mrf.mxu0  ;;  %992 = vmatprep.mubr.bf16.mxu1 %v494_v63  ;;  %vm1217_vm1 = vmand %vm386_vm12, %vm402_vm13 }
  0xef   :  { %vm405_vm2 = vcmp.eq.f32.partialorder %v967_v1, 0.0  ;;  %993 = vmatmul.mubr.bf16.vlgmr.msra.gmra.mxu1 %v495_v0  ;;  %v434_v10 = vsel %vm1217_vm1, 1.0, %v261_v62 }
  0xf0   :  { %vm1222_vm4 = vmand %vm389_vm14, %vm405_vm2  ;;  %v264_v4 = vpop.f32.mrf.mxu0 }
  0xf1   :  { %vm403_vm6 = vcmp.eq.f32.partialorder %v264_v4, 0.0  ;;  %v437_v7 = vsel %vm1222_vm4, 1.0, %v967_v1  ;;  %vm394_vm4 = vcmp.eq.s32.totalorder %v376_v21, %v1190_v46 }
  0xf2   :  { %vm419_vm7 = vmand %vm387_vm3, %vm403_vm6  ;;  %v970_v8 = vpop.f32.mrf.mxu0  ;;  %v497_v16 = vpack.c.bf16 %v437_v7, %v436_v13  ;;  %vm397_vm6 = vcmp.eq.s32.totalorder %v379_v22, %v1190_v46 }
  0xf3   :  { %v435_v11 = vsel %vm419_vm7, 1.0, %v264_v4  ;;  %vm408_vm12 = vcmp.eq.f32.partialorder %v970_v8, 0.0  ;;  %vm396_vm7 = vcmp.eq.s32.totalorder %v378_v25, %v1190_v46  ;;  %v778_v4 = vpop.permute.xlu1 %777 }
  0xf4   :  { %v496_v14 = vpack.c.bf16 %v435_v11, %v434_v10  ;;  %v277_v15 = vpop.f32.mrf.mxu0  ;;  %vm424_vm1 = vmand %vm392_vm11, %vm408_vm12  ;;  %vm395_vm11 = vcmp.eq.s32.totalorder %v377_v28, %v1190_v46  ;;  %v763_v46 = vpop.permute.xlu0 %762 }
  0xf5   :  { %vm406_vm9 = vcmp.eq.f32.partialorder %v277_v15, 0.0  ;;  %v440_v29 = vsel %vm424_vm1, 1.0, %v970_v8 }
  0xf6   :  { %v971_v17 = vpop.f32.mrf.mxu0  ;;  %996 = vmatprep.mubr.bf16.mxu1 %v496_v14  ;;  %vm1237_vm13 = vmand %vm390_vm8, %vm406_vm9 }
  0xf7   :  { %vm409_vm14 = vcmp.eq.f32.partialorder %v971_v17, 0.0  ;;  %997 = vmatmul.mubr.bf16.gmra.mxu1 %v497_v16  ;;  %v438_v26 = vsel %vm1237_vm13, 1.0, %v277_v15  ;;  %v788_v18 = vpop.permute.xlu1 %787 }
  0xf8   :  { %vm1242_vm0 = vmand %vm393_vm10, %vm409_vm14  ;;  %v280_v20 = vpop.f32.mrf.mxu0  ;;  %v773_v59 = vpop.permute.xlu0 %772 }
  0xf9   :  { %vm407_vm2 = vcmp.eq.f32.partialorder %v280_v20, 0.0  ;;  %v441_v23 = vsel %vm1242_vm0, 1.0, %v971_v17 }
  0xfa   :  { %vm423_vm3 = vmand %vm391_vm15, %vm407_vm2  ;;  %v974_v24 = vpop.f32.mrf.mxu0  ;;  %v499_v32 = vpack.c.bf16 %v441_v23, %v440_v29 }
  0xfb   :  { %v439_v27 = vsel %vm423_vm3, 1.0, %v280_v20  ;;  %vm412_vm8 = vcmp.eq.f32.partialorder %v974_v24, 0.0 }
  0xfc   :  { %v498_v30 = vpack.c.bf16 %v439_v27, %v438_v26  ;;  %v293_v31 = vpop.f32.mrf.mxu0  ;;  %vm428_vm13 = vmand %vm396_vm7, %vm412_vm8  ;;  %v783_v9 = vpop.permute.xlu0 %782 }
  0xfd   :  { %vm410_vm5 = vcmp.eq.f32.partialorder %v293_v31, 0.0  ;;  %v444_v38 = vsel %vm428_vm13, 1.0, %v974_v24 }
  0xfe   :  { %v975_v33 = vpop.f32.mrf.mxu0  ;;  %1000 = vmatprep.mubr.bf16.mxu1 %v498_v30  ;;  %vm426_vm9 = vmand %vm394_vm4, %vm410_vm5 }
  0xff   :  { %vm413_vm10 = vcmp.eq.f32.partialorder %v975_v33, 0.0  ;;  %1001 = vmatmul.mubr.bf16.gmra.mxu1 %v499_v32  ;;  %v442_v36 = vsel %vm426_vm9, 1.0, %v293_v31  ;;  %v798_v32 = vpop.permute.xlu1 %797 }
 0x100   :  { %vm429_vm12 = vmand %vm397_vm6, %vm413_vm10  ;;  %v296_v34 = vpop.f32.mrf.mxu0  ;;  %v793_v23 = vpop.permute.xlu0 %792 }
 0x101   :  { %vm411_vm14 = vcmp.eq.f32.partialorder %v296_v34, 0.0  ;;  %v445_v35 = vsel %vm429_vm12, 1.0, %v975_v33 }
 0x102   :  { %vm427_vm15 = vmand %vm395_vm11, %vm411_vm14  ;;  %v501_v40 = vpack.c.bf16 %v445_v35, %v444_v38 }
 0x103   :  { %v443_v37 = vsel %vm427_vm15, 1.0, %v296_v34 }
 0x104   :  { %v500_v39 = vpack.c.bf16 %v443_v37, %v442_v36  ;;  %v803_v37 = vpop.permute.xlu0 %802 }
 0x106   :  { %1004 = vmatprep.mubr.bf16.mxu1 %v500_v39 }
 0x107   :  { %1005 = vmatmul.mubr.bf16.gmra.mxu1 %v501_v40 }
 0x1af   :  { %v994_v48 = vpop.f32.mrf.mxu1 }
 0x1b0   :  { %v812_v50 = vmul.f32 %v994_v48, %v743_v42 }
 0x1b1   :  { %v600_v51 = vpop.f32.mrf.mxu1 }
 0x1b2   :  { %v835_v52 = vadd.f32 %v1261_v49, %v812_v50  ;;  %v810_v53 = vmul.f32 %v733_v41, %v600_v51 }
 0x1b3   :  { %v995_v55 = vpop.f32.mrf.mxu1 }
 0x1b4   :  { %v851_v56 = vmax.f32 %v835_v52, 0.0  ;;  %v833_v57 = vadd.f32 %v1261_v49, %v810_v53  ;;  %v813_v58 = vmul.f32 %v995_v55, %v748_v44 }
 0x1b5   :  { %v603_v60 = vpop.f32.mrf.mxu1 }
 0x1b6   :  { %867 = vst [vmem:[%s1332_s5 + $0x10] sm:$0xff] %v851_v56  ;;  %v849_v61 = vmax.f32 %v833_v57, 0.0  ;;  %v836_v62 = vadd.f32 %v1261_v49, %v813_v58  ;;  %v811_v63 = vmul.f32 %v738_v43, %v603_v60 }
 0x1b7   :  { %v998_v0 = vpop.f32.mrf.mxu1 }
 0x1b8   :  { %865 = vst [vmem:[%s1332_s5] sm:$0xff] %v849_v61  ;;  %v852_v1 = vmax.f32 %v836_v62, 0.0  ;;  %v834_v2 = vadd.f32 %v1261_v49, %v811_v63  ;;  %v816_v3 = vmul.f32 %v998_v0, %v763_v46 }
 0x1b9   :  { %v616_v5 = vpop.f32.mrf.mxu1 }
 0x1ba   :  { %868 = vst [vmem:[%s1332_s5 + $0x18] sm:$0xff] %v852_v1  ;;  %v850_v6 = vmax.f32 %v834_v2, 0.0  ;;  %v839_v7 = vadd.f32 %v1261_v49, %v816_v3  ;;  %v814_v8 = vmul.f32 %v753_v45, %v616_v5 }
 0x1bb   :  { %v999_v10 = vpop.f32.mrf.mxu1 }
 0x1bc   :  { %866 = vst [vmem:[%s1332_s5 + $0x8] sm:$0xff] %v850_v6  ;;  %v855_v11 = vmax.f32 %v839_v7, 0.0  ;;  %v837_v12 = vadd.f32 %v1261_v49, %v814_v8  ;;  %v817_v13 = vmul.f32 %v999_v10, %v768_v54 }
 0x1bd   :  { %v619_v14 = vpop.f32.mrf.mxu1 }
 0x1be   :  { %871 = vst [vmem:[%s1332_s5 + $0x30] sm:$0xff] %v855_v11  ;;  %v853_v15 = vmax.f32 %v837_v12, 0.0  ;;  %v840_v16 = vadd.f32 %v1261_v49, %v817_v13  ;;  %v815_v17 = vmul.f32 %v758_v47, %v619_v14  ;;  %v808_v47 = vpop.permute.xlu1 %807 }
 0x1bf   :  { %v1002_v19 = vpop.f32.mrf.mxu1 }
 0x1c0   :  { %869 = vst [vmem:[%s1332_s5 + $0x20] sm:$0xff] %v853_v15  ;;  %v856_v20 = vmax.f32 %v840_v16, 0.0  ;;  %v838_v21 = vadd.f32 %v1261_v49, %v815_v17  ;;  %v820_v22 = vmul.f32 %v1002_v19, %v783_v9 }
 0x1c1   :  { %v632_v24 = vpop.f32.mrf.mxu1 }
 0x1c2   :  { %872 = vst [vmem:[%s1332_s5 + $0x38] sm:$0xff] %v856_v20  ;;  %v854_v25 = vmax.f32 %v838_v21, 0.0  ;;  %v843_v26 = vadd.f32 %v1261_v49, %v820_v22  ;;  %v818_v27 = vmul.f32 %v773_v59, %v632_v24 }
 0x1c3   :  { %v1003_v28 = vpop.f32.mrf.mxu1 }
 0x1c4   :  { %870 = vst [vmem:[%s1332_s5 + $0x28] sm:$0xff] %v854_v25  ;;  %v859_v29 = vmax.f32 %v843_v26, 0.0  ;;  %v841_v30 = vadd.f32 %v1261_v49, %v818_v27  ;;  %v821_v31 = vmul.f32 %v1003_v28, %v788_v18 }
 0x1c5   :  { %v635_v33 = vpop.f32.mrf.mxu1 }
 0x1c6   :  { %875 = vst [vmem:[%s1332_s5 + $0x50] sm:$0xff] %v859_v29  ;;  %v857_v34 = vmax.f32 %v841_v30, 0.0  ;;  %v844_v35 = vadd.f32 %v1261_v49, %v821_v31  ;;  %v819_v36 = vmul.f32 %v778_v4, %v635_v33 }
 0x1c7   :  { %v1006_v38 = vpop.f32.mrf.mxu1 }
 0x1c8   :  { %873 = vst [vmem:[%s1332_s5 + $0x40] sm:$0xff] %v857_v34  ;;  %v860_v39 = vmax.f32 %v844_v35, 0.0  ;;  %v842_v40 = vadd.f32 %v1261_v49, %v819_v36  ;;  %v824_v41 = vmul.f32 %v1006_v38, %v803_v37 }
 0x1c9   :  { %v648_v42 = vpop.f32.mrf.mxu1 }
 0x1ca   :  { %876 = vst [vmem:[%s1332_s5 + $0x58] sm:$0xff] %v860_v39  ;;  %v858_v43 = vmax.f32 %v842_v40, 0.0  ;;  %v847_v44 = vadd.f32 %v1261_v49, %v824_v41  ;;  %v822_v45 = vmul.f32 %v793_v23, %v648_v42 }
 0x1cb   :  { %v1007_v46 = vpop.f32.mrf.mxu1 }
 0x1cc   :  { %874 = vst [vmem:[%s1332_s5 + $0x48] sm:$0xff] %v858_v43  ;;  %v863_v48 = vmax.f32 %v847_v44, 0.0  ;;  %v845_v50 = vadd.f32 %v1261_v49, %v822_v45  ;;  %v825_v51 = vmul.f32 %v1007_v46, %v808_v47 }
 0x1cd   :  { %v651_v52 = vpop.f32.mrf.mxu1 }
 0x1ce   :  { %879 = vst [vmem:[%s1332_s5 + $0x70] sm:$0xff] %v863_v48  ;;  %v861_v53 = vmax.f32 %v845_v50, 0.0  ;;  %v848_v54 = vadd.f32 %v1261_v49, %v825_v51  ;;  %v823_v55 = vmul.f32 %v798_v32, %v651_v52 }
 0x1d0   :  { %877 = vst [vmem:[%s1332_s5 + $0x60] sm:$0xff] %v861_v53  ;;  %v864_v56 = vmax.f32 %v848_v54, 0.0  ;;  %v846_v57 = vadd.f32 %v1261_v49, %v823_v55 }
 0x1d2   :  { %880 = vst [vmem:[%s1332_s5 + $0x78] sm:$0xff] %v864_v56  ;;  %v862_v58 = vmax.f32 %v846_v57, 0.0 }
 0x1d4   :  { %878 = vst [vmem:[%s1332_s5 + $0x68] sm:$0xff] %v862_v58 }

</bundles_post_ra>
